<compile_context>
chip_gen: v6e
topology: v6e:2x2x1
jax: 0.10.0
libtpu: 0.0.40
codegen_flags: <defaults>
</compile_context>

<pallas_src>
import functools

import jax
import jax.numpy as jnp
from jax.experimental import pallas as pl
from jax.experimental.pallas import tpu as pltpu


def _round_up(x, m):
    return ((x + m - 1) // m) * m


def _pick_chunk(tb):
    """Largest sub-chunk (<= 2048 rows) that evenly divides the batch tile."""
    for c in (2048, 1024, 512, 256, 128):
        if tb >= c and tb % c == 0:
            return c
    return tb


def _plan(B, tile_b):
    """Per-generation batch-tile / VMEM planning."""
    try:
        vmem_cap = int(pltpu.get_tpu_info().vmem_capacity_bytes)
    except Exception:
        vmem_cap = 64 * 1024 * 1024            # conservative (v7x-sized) default
    if vmem_cap >= 100 * 1024 * 1024:          # v5e / v6e: 128 MiB physical
        vmem_limit = 96 * 1024 * 1024
        tb_cap = 16384
    else:                                      # v7x: 64 MiB physical
        vmem_limit = 48 * 1024 * 1024
        tb_cap = 8192

    if B < 128:
        tb = B                                 # single exact block (always legal)
    else:
        tb = min(tile_b, tb_cap)
        # Keep >= 2-4 grid steps so both v7x TensorCores get work and the input
        # DMA pipeline has steps to overlap; never exceeds B for B >= 128.
        tb = min(tb, _round_up(pl.cdiv(B, 4), 128))
        tb = max(128, _round_up(tb, 128))
    chunk = _pick_chunk(tb)
    return tb, chunk, vmem_limit


def _widedeep_kernel(scal_ref, xw_ref, xd_ref, ww_ref, w1_ref, b1_ref,
                     w2_ref, b2_ref, w3_ref, out_ref, *, chunk, n_chunks,
                     dense_out):
    bw = scal_ref[0]
    b3 = scal_ref[1]
    gbias = scal_ref[2]

    ww = ww_ref[...]          # (1, Dw)  VMEM-resident
    w1 = w1_ref[...]          # (Dd, H)
    b1 = b1_ref[...]          # (1, H)
    w2 = w2_ref[...]          # (H, H)
    b2 = b2_ref[...]          # (1, H)
    w3 = w3_ref[...]          # (1, H)

    def do_chunk(r0):
        xw = xw_ref[pl.ds(r0, chunk), :].astype(jnp.float32)    # (chunk, Dw)
        xd = xd_ref[pl.ds(r0, chunk), :].astype(jnp.float32)    # (chunk, Dd)

        # ---- Wide path: VPU multiply + cross-lane reduce (N=1 GEMV off MXU).
        wide = jnp.sum(xw * ww, axis=-1, keepdims=True) + bw    # (chunk, 1)

        # ---- Deep path: two MXU matmuls, f32 accumulation, ReLU on VPU.
        h = jnp.dot(xd, w1, preferred_element_type=jnp.float32) + b1
        h = jnp.maximum(h, 0.0)
        h = jnp.dot(h, w2, preferred_element_type=jnp.float32) + b2
        h = jnp.maximum(h, 0.0)
        deep = jnp.sum(h * w3, axis=-1, keepdims=True) + b3     # (chunk, 1)

        # ---- Combine and write one packed slab.
        logit = wide + deep + gbias
        packed = jnp.concatenate([wide, deep, logit], axis=-1)  # (chunk, 3)
        if dense_out:
            # Lane-dense: batch along lanes -> unmasked full-width stores.
            out_ref[:, pl.ds(r0, chunk)] = packed.T             # (3, chunk)
        else:
            out_ref[pl.ds(r0, chunk), :] = packed               # (chunk, 3)

    if n_chunks <= 8:
        # Static unroll: chunk offsets are Python constants (zero-cost views).
        for ci in range(n_chunks):
            do_chunk(ci * chunk)
    else:
        @pl.loop(0, n_chunks)
        def _(ci):
            do_chunk(pl.multiple_of(ci * chunk, chunk))


def _build_call(B, Dw, Dd, H, tb, chunk, dense_out, vmem_limit):
    n_chunks = tb // chunk
    kernel = functools.partial(_widedeep_kernel, chunk=chunk,
                               n_chunks=n_chunks, dense_out=dense_out)
    grid = (pl.cdiv(B, tb),)
    smem = pl.BlockSpec(memory_space=pltpu.MemorySpace.SMEM)
    in_specs = [
        smem,                                          # [bw, b3, global_bias]
        pl.BlockSpec((tb, Dw), lambda i: (i, 0)),      # x_wide batch tile
        pl.BlockSpec((tb, Dd), lambda i: (i, 0)),      # x_deep batch tile
        pl.BlockSpec((1, Dw), lambda i: (0, 0)),       # ww   (resident)
        pl.BlockSpec((Dd, H), lambda i: (0, 0)),       # w1   (resident)
        pl.BlockSpec((1, H), lambda i: (0, 0)),        # b1   (resident)
        pl.BlockSpec((H, H), lambda i: (0, 0)),        # w2   (resident)
        pl.BlockSpec((1, H), lambda i: (0, 0)),        # b2   (resident)
        pl.BlockSpec((1, H), lambda i: (0, 0)),        # w3   (resident)
    ]
    if dense_out:
        out_shape = jax.ShapeDtypeStruct((3, B), jnp.float32)
        out_spec = pl.BlockSpec((3, tb), lambda i: (0, i))
    else:
        out_shape = jax.ShapeDtypeStruct((B, 3), jnp.float32)
        out_spec = pl.BlockSpec((tb, 3), lambda i: (i, 0))
    return pl.pallas_call(
        kernel,
        out_shape=out_shape,
        grid=grid,
        in_specs=in_specs,
        out_specs=out_spec,
        compiler_params=pltpu.CompilerParams(
            dimension_semantics=("parallel",),      # megacore shard on v7x
            vmem_limit_bytes=vmem_limit,            # per-generation budget
        ),
    )


def widedeep_forward(x_wide, x_deep, params, *, tile_b=16384):
    """Returns (wide_logit, deep_logit, logit), each (B, 1) float32."""
    B, Dw = x_wide.shape
    Bd, Dd = x_deep.shape
    assert B == Bd
    H = params["w1"].shape[1]

    # Tiny parameter reshapes only; the big activation streams are untouched.
    ww = params["ww"].reshape(1, Dw).astype(jnp.float32)
    w1 = params["w1"].astype(jnp.float32)
    w2 = params["w2"].astype(jnp.float32)
    w3 = params["w3"].reshape(1, H).astype(jnp.float32)
    b1 = params["b1"].reshape(1, H).astype(jnp.float32)
    b2 = params["b2"].reshape(1, H).astype(jnp.float32)
    scalars = jnp.concatenate(
        [params["bw"].reshape(-1),
         params["b3"].reshape(-1),
         params["gbias"].reshape(-1)]).astype(jnp.float32)      # (3,) SMEM

    tb, chunk, vmem_limit = _plan(B, tile_b)
    args = (scalars, x_wide, x_deep, ww, w1, b1, w2, b2, w3)

    try:
        # Preferred path: lane-dense (3, B) packed output.
        packed = _build_call(B, Dw, Dd, H, tb, chunk, True, vmem_limit)(*args)
        packed = jax.block_until_ready(packed)
        wide_logit = packed[0].reshape(B, 1)
        deep_logit = packed[1].reshape(B, 1)
        logit = packed[2].reshape(B, 1)
    except Exception:
        # Fallback: lane-sparse (B, 3) output (no in-kernel transpose).
        packed = _build_call(B, Dw, Dd, H, tb, chunk, False, vmem_limit)(*args)
        wide_logit = packed[:, 0:1]
        deep_logit = packed[:, 1:2]
        logit = packed[:, 2:3]
    return wide_logit, deep_logit, logit


def make_params(key, wide_dim, deep_dim, hidden):
    ks = jax.random.split(key, 9)
    s = 0.1
    return {
        "ww": s * jax.random.normal(ks[0], (wide_dim, 1), jnp.float32),
        "bw": s * jax.random.normal(ks[1], (1,), jnp.float32),
        "w1": s * jax.random.normal(ks[2], (deep_dim, hidden), jnp.float32),
        "b1": s * jax.random.normal(ks[3], (hidden,), jnp.float32),
        "w2": s * jax.random.normal(ks[4], (hidden, hidden), jnp.float32),
        "b2": s * jax.random.normal(ks[5], (hidden,), jnp.float32),
        "w3": s * jax.random.normal(ks[6], (hidden, 1), jnp.float32),
        "b3": s * jax.random.normal(ks[7], (1,), jnp.float32),
        # config.use_bias -> nn.Parameter(torch.zeros((1,))); random here so
        # the bias-add path is actually exercised by the checks.
        "gbias": s * jax.random.normal(ks[8], (1,), jnp.float32),
    }


def reference_forward(x_wide, x_deep, p):
    """Pure-JAX f32 reference of the PyTorch module."""
    wide = x_wide @ p["ww"] + p["bw"].reshape(1, 1)
    h = jnp.maximum(x_deep @ p["w1"] + p["b1"].reshape(1, -1), 0.0)
    h = jnp.maximum(h @ p["w2"] + p["b2"].reshape(1, -1), 0.0)
    deep = h @ p["w3"] + p["b3"].reshape(1, 1)
    logit = wide + deep + p["gbias"].reshape(1, 1)
    return wide, deep, logit


def _check(x_wide, x_deep, params, tile_b):
    wide, deep, logit = widedeep_forward(x_wide, x_deep, params, tile_b=tile_b)
    jax.block_until_ready((wide, deep, logit))
    rw, rd, rl = reference_forward(x_wide, x_deep, params)
    assert wide.shape == rw.shape and deep.shape == rd.shape and logit.shape == rl.shape
    assert bool(jnp.allclose(wide, rw, atol=1e-2, rtol=1e-2)), "wide mismatch"
    assert bool(jnp.allclose(deep, rd, atol=1e-2, rtol=1e-2)), "deep mismatch"
    assert bool(jnp.allclose(logit, rl, atol=1e-2, rtol=1e-2)), "logit mismatch"


if __name__ == "__main__":
    key = jax.random.PRNGKey(0)
    k_p, k1, k2, k3, k4, k5, k6 = jax.random.split(key, 7)

    WIDE_DIM, DEEP_DIM, HIDDEN = 16, 32, 32
    params = make_params(k_p, WIDE_DIM, DEEP_DIM, HIDDEN)

    # Small single-block case (batch < 128 -> single exact tile).
    B1 = 8
    _check(jax.random.normal(k1, (B1, WIDE_DIM), jnp.float32),
           jax.random.normal(k2, (B1, DEEP_DIM), jnp.float32),
           params, tile_b=16384)

    # Multi-step grid with a ragged last tile (no wrapper padding).
    B2 = 200
    _check(jax.random.normal(k3, (B2, WIDE_DIM), jnp.float32),
           jax.random.normal(k4, (B2, DEEP_DIM), jnp.float32),
           params, tile_b=128)

    # Larger batch: several grid steps + multi-chunk deep path inside a tile.
    B3 = 16384
    _check(jax.random.normal(k5, (B3, WIDE_DIM), jnp.float32),
           jax.random.normal(k6, (B3, DEEP_DIM), jnp.float32),
           params, tile_b=16384)

    print("KERNEL_OK")
</pallas_src>

<mosaic_0001>
module attributes {stable_mosaic.version = 11 : i64} {
  func.func @_widedeep_kernel(%arg0: i32, %arg1: memref<3xf32, #tpu.memory_space<smem>>, %arg2: memref<8x16xf32, #tpu.memory_space<vmem>>, %arg3: memref<8x32xf32, #tpu.memory_space<vmem>>, %arg4: memref<1x16xf32, #tpu.memory_space<vmem>>, %arg5: memref<32x32xf32, #tpu.memory_space<vmem>>, %arg6: memref<1x32xf32, #tpu.memory_space<vmem>>, %arg7: memref<32x32xf32, #tpu.memory_space<vmem>>, %arg8: memref<1x32xf32, #tpu.memory_space<vmem>>, %arg9: memref<1x32xf32, #tpu.memory_space<vmem>>, %arg10: memref<3x8xf32, #tpu.memory_space<vmem>>) attributes {dimension_semantics = [#tpu.dimension_semantics<parallel>], iteration_bounds = array<i64: 1>, scalar_prefetch = 0 : i64, scratch_operands = 0 : i64, tpu.core_type = #tpu.core_type<tc>, window_params = [{transform_indices = @transform_0, window_bounds = array<i64: 3>}, {transform_indices = @transform_1, window_bounds = array<i64: 8, 16>}, {transform_indices = @transform_2, window_bounds = array<i64: 8, 32>}, {pipeline_mode = #tpu.pipeline_mode<synchronous>, transform_indices = @transform_3, window_bounds = array<i64: 1, 16>}, {pipeline_mode = #tpu.pipeline_mode<synchronous>, transform_indices = @transform_4, window_bounds = array<i64: 32, 32>}, {pipeline_mode = #tpu.pipeline_mode<synchronous>, transform_indices = @transform_5, window_bounds = array<i64: 1, 32>}, {pipeline_mode = #tpu.pipeline_mode<synchronous>, transform_indices = @transform_6, window_bounds = array<i64: 32, 32>}, {pipeline_mode = #tpu.pipeline_mode<synchronous>, transform_indices = @transform_7, window_bounds = array<i64: 1, 32>}, {pipeline_mode = #tpu.pipeline_mode<synchronous>, transform_indices = @transform_8, window_bounds = array<i64: 1, 32>}, {transform_indices = @transform_9, window_bounds = array<i64: 3, 8>}]} {
    %c0 = arith.constant 0 : index
    %0 = memref.load %arg1[%c0] : memref<3xf32, #tpu.memory_space<smem>>
    %c1 = arith.constant 1 : index
    %1 = memref.load %arg1[%c1] : memref<3xf32, #tpu.memory_space<smem>>
    %c2 = arith.constant 2 : index
    %2 = memref.load %arg1[%c2] : memref<3xf32, #tpu.memory_space<smem>>
    %c0_0 = arith.constant 0 : index
    %c0_1 = arith.constant 0 : index
    %3 = vector.load %arg4[%c0_0, %c0_1] : memref<1x16xf32, #tpu.memory_space<vmem>>, vector<1x16xf32>
    %c0_2 = arith.constant 0 : index
    %c0_3 = arith.constant 0 : index
    %4 = vector.load %arg5[%c0_2, %c0_3] : memref<32x32xf32, #tpu.memory_space<vmem>>, vector<32x32xf32>
    %c0_4 = arith.constant 0 : index
    %c0_5 = arith.constant 0 : index
    %5 = vector.load %arg6[%c0_4, %c0_5] : memref<1x32xf32, #tpu.memory_space<vmem>>, vector<1x32xf32>
    %c0_6 = arith.constant 0 : index
    %c0_7 = arith.constant 0 : index
    %6 = vector.load %arg7[%c0_6, %c0_7] : memref<32x32xf32, #tpu.memory_space<vmem>>, vector<32x32xf32>
    %c0_8 = arith.constant 0 : index
    %c0_9 = arith.constant 0 : index
    %7 = vector.load %arg8[%c0_8, %c0_9] : memref<1x32xf32, #tpu.memory_space<vmem>>, vector<1x32xf32>
    %c0_10 = arith.constant 0 : index
    %c0_11 = arith.constant 0 : index
    %8 = vector.load %arg9[%c0_10, %c0_11] : memref<1x32xf32, #tpu.memory_space<vmem>>, vector<1x32xf32>
    %c0_12 = arith.constant 0 : index
    %c0_13 = arith.constant 0 : index
    %9 = vector.load %arg2[%c0_12, %c0_13] : memref<8x16xf32, #tpu.memory_space<vmem>>, vector<8x16xf32>
    %c0_14 = arith.constant 0 : index
    %c0_15 = arith.constant 0 : index
    %10 = vector.load %arg3[%c0_14, %c0_15] : memref<8x32xf32, #tpu.memory_space<vmem>>, vector<8x32xf32>
    %11 = vector.broadcast %3 : vector<1x16xf32> to vector<8x16xf32>
    %12 = arith.mulf %9, %11 : vector<8x16xf32>
    %cst = arith.constant dense<0.000000e+00> : vector<8xf32>
    %13 = vector.multi_reduction <add>, %12, %cst [1] : vector<8x16xf32> to vector<8xf32>
    %14 = vector.shape_cast %13 : vector<8xf32> to vector<8x1xf32>
    %15 = vector.broadcast %0 : f32 to vector<8x1xf32>
    %16 = arith.addf %14, %15 : vector<8x1xf32>
    %cst_16 = arith.constant dense<0.000000e+00> : vector<8x32xf32>
    %17 = tpu.matmul %10, %4, %cst_16 {dimension_numbers = #tpu.dot_dimension_numbers<[1], [0], [0], [1], [0, 0, 1, 1], [], []>} : vector<8x32xf32>, vector<32x32xf32>, vector<8x32xf32> -> vector<8x32xf32>
    %18 = vector.broadcast %5 : vector<1x32xf32> to vector<8x32xf32>
    %19 = arith.addf %17, %18 : vector<8x32xf32>
    %cst_17 = arith.constant 0.000000e+00 : f32
    %20 = vector.broadcast %cst_17 : f32 to vector<8x32xf32>
    %21 = arith.maximumf %19, %20 : vector<8x32xf32>
    %cst_18 = arith.constant dense<0.000000e+00> : vector<8x32xf32>
    %22 = tpu.matmul %21, %6, %cst_18 {dimension_numbers = #tpu.dot_dimension_numbers<[1], [0], [0], [1], [0, 0, 1, 1], [], []>} : vector<8x32xf32>, vector<32x32xf32>, vector<8x32xf32> -> vector<8x32xf32>
    %23 = vector.broadcast %7 : vector<1x32xf32> to vector<8x32xf32>
    %24 = arith.addf %22, %23 : vector<8x32xf32>
    %cst_19 = arith.constant 0.000000e+00 : f32
    %25 = vector.broadcast %cst_19 : f32 to vector<8x32xf32>
    %26 = arith.maximumf %24, %25 : vector<8x32xf32>
    %27 = vector.broadcast %8 : vector<1x32xf32> to vector<8x32xf32>
    %28 = arith.mulf %26, %27 : vector<8x32xf32>
    %cst_20 = arith.constant dense<0.000000e+00> : vector<8xf32>
    %29 = vector.multi_reduction <add>, %28, %cst_20 [1] : vector<8x32xf32> to vector<8xf32>
    %30 = vector.shape_cast %29 : vector<8xf32> to vector<8x1xf32>
    %31 = vector.broadcast %1 : f32 to vector<8x1xf32>
    %32 = arith.addf %30, %31 : vector<8x1xf32>
    %33 = arith.addf %16, %32 : vector<8x1xf32>
    %34 = vector.broadcast %2 : f32 to vector<8x1xf32>
    %35 = arith.addf %33, %34 : vector<8x1xf32>
    %36 = tpu.concatenate %16, %32, %35 in 1 : vector<8x1xf32>, vector<8x1xf32>, vector<8x1xf32> -> vector<8x3xf32>
    %37 = tpu.transpose %36, [1, 0] : vector<8x3xf32> -> vector<3x8xf32>
    %c0_21 = arith.constant 0 : index
    %c0_22 = arith.constant 0 : index
    %38 = vector.load %arg10[%c0_21, %c0_22] : memref<3x8xf32, #tpu.memory_space<vmem>>, vector<3x8xf32>
    tpu.vector_store %arg10[%c0_21, %c0_22], %37 {strides = array<i32>} : memref<3x8xf32, #tpu.memory_space<vmem>>, vector<3x8xf32>,
    return
  }
  func.func @transform_0(%arg0: i32) -> i32 {
    %c0_i32 = arith.constant 0 : i32
    %c0_i32_0 = arith.constant 0 : i32
    return %c0_i32 : i32
  }
  func.func @transform_1(%arg0: i32) -> (i32, i32) {
    %c0_i32 = arith.constant 0 : i32
    %c0_i32_0 = arith.constant 0 : i32
    return %arg0, %c0_i32 : i32, i32
  }
  func.func @transform_2(%arg0: i32) -> (i32, i32) {
    %c0_i32 = arith.constant 0 : i32
    %c0_i32_0 = arith.constant 0 : i32
    return %arg0, %c0_i32 : i32, i32
  }
  func.func @transform_3(%arg0: i32) -> (i32, i32) {
    %c0_i32 = arith.constant 0 : i32
    %c0_i32_0 = arith.constant 0 : i32
    %c0_i32_1 = arith.constant 0 : i32
    return %c0_i32, %c0_i32_0 : i32, i32
  }
  func.func @transform_4(%arg0: i32) -> (i32, i32) {
    %c0_i32 = arith.constant 0 : i32
    %c0_i32_0 = arith.constant 0 : i32
    %c0_i32_1 = arith.constant 0 : i32
    return %c0_i32, %c0_i32_0 : i32, i32
  }
  func.func @transform_5(%arg0: i32) -> (i32, i32) {
    %c0_i32 = arith.constant 0 : i32
    %c0_i32_0 = arith.constant 0 : i32
    %c0_i32_1 = arith.constant 0 : i32
    return %c0_i32, %c0_i32_0 : i32, i32
  }
  func.func @transform_6(%arg0: i32) -> (i32, i32) {
    %c0_i32 = arith.constant 0 : i32
    %c0_i32_0 = arith.constant 0 : i32
    %c0_i32_1 = arith.constant 0 : i32
    return %c0_i32, %c0_i32_0 : i32, i32
  }
  func.func @transform_7(%arg0: i32) -> (i32, i32) {
    %c0_i32 = arith.constant 0 : i32
    %c0_i32_0 = arith.constant 0 : i32
    %c0_i32_1 = arith.constant 0 : i32
    return %c0_i32, %c0_i32_0 : i32, i32
  }
  func.func @transform_8(%arg0: i32) -> (i32, i32) {
    %c0_i32 = arith.constant 0 : i32
    %c0_i32_0 = arith.constant 0 : i32
    %c0_i32_1 = arith.constant 0 : i32
    return %c0_i32, %c0_i32_0 : i32, i32
  }
  func.func @transform_9(%arg0: i32) -> (i32, i32) {
    %c0_i32 = arith.constant 0 : i32
    %c0_i32_0 = arith.constant 0 : i32
    return %c0_i32, %arg0 : i32, i32
  }
}

module attributes {stable_mosaic.version = 11 : i64} {
  func.func @_widedeep_kernel(%arg0: i32, %arg1: memref<3xf32, #tpu.memory_space<smem>>, %arg2: memref<8x16xf32, #tpu.memory_space<vmem>>, %arg3: memref<8x32xf32, #tpu.memory_space<vmem>>, %arg4: memref<1x16xf32, #tpu.memory_space<vmem>>, %arg5: memref<32x32xf32, #tpu.memory_space<vmem>>, %arg6: memref<1x32xf32, #tpu.memory_space<vmem>>, %arg7: memref<32x32xf32, #tpu.memory_space<vmem>>, %arg8: memref<1x32xf32, #tpu.memory_space<vmem>>, %arg9: memref<1x32xf32, #tpu.memory_space<vmem>>, %arg10: memref<8x3xf32, #tpu.memory_space<vmem>>) attributes {dimension_semantics = [#tpu.dimension_semantics<parallel>], iteration_bounds = array<i64: 1>, scalar_prefetch = 0 : i64, scratch_operands = 0 : i64, tpu.core_type = #tpu.core_type<tc>, window_params = [{transform_indices = @transform_0, window_bounds = array<i64: 3>}, {transform_indices = @transform_1, window_bounds = array<i64: 8, 16>}, {transform_indices = @transform_2, window_bounds = array<i64: 8, 32>}, {pipeline_mode = #tpu.pipeline_mode<synchronous>, transform_indices = @transform_3, window_bounds = array<i64: 1, 16>}, {pipeline_mode = #tpu.pipeline_mode<synchronous>, transform_indices = @transform_4, window_bounds = array<i64: 32, 32>}, {pipeline_mode = #tpu.pipeline_mode<synchronous>, transform_indices = @transform_5, window_bounds = array<i64: 1, 32>}, {pipeline_mode = #tpu.pipeline_mode<synchronous>, transform_indices = @transform_6, window_bounds = array<i64: 32, 32>}, {pipeline_mode = #tpu.pipeline_mode<synchronous>, transform_indices = @transform_7, window_bounds = array<i64: 1, 32>}, {pipeline_mode = #tpu.pipeline_mode<synchronous>, transform_indices = @transform_8, window_bounds = array<i64: 1, 32>}, {transform_indices = @transform_9, window_bounds = array<i64: 8, 3>}]} {
    %c0 = arith.constant 0 : index
    %0 = memref.load %arg1[%c0] : memref<3xf32, #tpu.memory_space<smem>>
    %c1 = arith.constant 1 : index
    %1 = memref.load %arg1[%c1] : memref<3xf32, #tpu.memory_space<smem>>
    %c2 = arith.constant 2 : index
    %2 = memref.load %arg1[%c2] : memref<3xf32, #tpu.memory_space<smem>>
    %c0_0 = arith.constant 0 : index
    %c0_1 = arith.constant 0 : index
    %3 = vector.load %arg4[%c0_0, %c0_1] : memref<1x16xf32, #tpu.memory_space<vmem>>, vector<1x16xf32>
    %c0_2 = arith.constant 0 : index
    %c0_3 = arith.constant 0 : index
    %4 = vector.load %arg5[%c0_2, %c0_3] : memref<32x32xf32, #tpu.memory_space<vmem>>, vector<32x32xf32>
    %c0_4 = arith.constant 0 : index
    %c0_5 = arith.constant 0 : index
    %5 = vector.load %arg6[%c0_4, %c0_5] : memref<1x32xf32, #tpu.memory_space<vmem>>, vector<1x32xf32>
    %c0_6 = arith.constant 0 : index
    %c0_7 = arith.constant 0 : index
    %6 = vector.load %arg7[%c0_6, %c0_7] : memref<32x32xf32, #tpu.memory_space<vmem>>, vector<32x32xf32>
    %c0_8 = arith.constant 0 : index
    %c0_9 = arith.constant 0 : index
    %7 = vector.load %arg8[%c0_8, %c0_9] : memref<1x32xf32, #tpu.memory_space<vmem>>, vector<1x32xf32>
    %c0_10 = arith.constant 0 : index
    %c0_11 = arith.constant 0 : index
    %8 = vector.load %arg9[%c0_10, %c0_11] : memref<1x32xf32, #tpu.memory_space<vmem>>, vector<1x32xf32>
    %c0_12 = arith.constant 0 : index
    %c0_13 = arith.constant 0 : index
    %9 = vector.load %arg2[%c0_12, %c0_13] : memref<8x16xf32, #tpu.memory_space<vmem>>, vector<8x16xf32>
    %c0_14 = arith.constant 0 : index
    %c0_15 = arith.constant 0 : index
    %10 = vector.load %arg3[%c0_14, %c0_15] : memref<8x32xf32, #tpu.memory_space<vmem>>, vector<8x32xf32>
    %11 = vector.broadcast %3 : vector<1x16xf32> to vector<8x16xf32>
    %12 = arith.mulf %9, %11 : vector<8x16xf32>
    %cst = arith.constant dense<0.000000e+00> : vector<8xf32>
    %13 = vector.multi_reduction <add>, %12, %cst [1] : vector<8x16xf32> to vector<8xf32>
    %14 = vector.shape_cast %13 : vector<8xf32> to vector<8x1xf32>
    %15 = vector.broadcast %0 : f32 to vector<8x1xf32>
    %16 = arith.addf %14, %15 : vector<8x1xf32>
    %cst_16 = arith.constant dense<0.000000e+00> : vector<8x32xf32>
    %17 = tpu.matmul %10, %4, %cst_16 {dimension_numbers = #tpu.dot_dimension_numbers<[1], [0], [0], [1], [0, 0, 1, 1], [], []>} : vector<8x32xf32>, vector<32x32xf32>, vector<8x32xf32> -> vector<8x32xf32>
    %18 = vector.broadcast %5 : vector<1x32xf32> to vector<8x32xf32>
    %19 = arith.addf %17, %18 : vector<8x32xf32>
    %cst_17 = arith.constant 0.000000e+00 : f32
    %20 = vector.broadcast %cst_17 : f32 to vector<8x32xf32>
    %21 = arith.maximumf %19, %20 : vector<8x32xf32>
    %cst_18 = arith.constant dense<0.000000e+00> : vector<8x32xf32>
    %22 = tpu.matmul %21, %6, %cst_18 {dimension_numbers = #tpu.dot_dimension_numbers<[1], [0], [0], [1], [0, 0, 1, 1], [], []>} : vector<8x32xf32>, vector<32x32xf32>, vector<8x32xf32> -> vector<8x32xf32>
    %23 = vector.broadcast %7 : vector<1x32xf32> to vector<8x32xf32>
    %24 = arith.addf %22, %23 : vector<8x32xf32>
    %cst_19 = arith.constant 0.000000e+00 : f32
    %25 = vector.broadcast %cst_19 : f32 to vector<8x32xf32>
    %26 = arith.maximumf %24, %25 : vector<8x32xf32>
    %27 = vector.broadcast %8 : vector<1x32xf32> to vector<8x32xf32>
    %28 = arith.mulf %26, %27 : vector<8x32xf32>
    %cst_20 = arith.constant dense<0.000000e+00> : vector<8xf32>
    %29 = vector.multi_reduction <add>, %28, %cst_20 [1] : vector<8x32xf32> to vector<8xf32>
    %30 = vector.shape_cast %29 : vector<8xf32> to vector<8x1xf32>
    %31 = vector.broadcast %1 : f32 to vector<8x1xf32>
    %32 = arith.addf %30, %31 : vector<8x1xf32>
    %33 = arith.addf %16, %32 : vector<8x1xf32>
    %34 = vector.broadcast %2 : f32 to vector<8x1xf32>
    %35 = arith.addf %33, %34 : vector<8x1xf32>
    %36 = tpu.concatenate %16, %32, %35 in 1 : vector<8x1xf32>, vector<8x1xf32>, vector<8x1xf32> -> vector<8x3xf32>
    %c0_21 = arith.constant 0 : index
    %c0_22 = arith.constant 0 : index
    %37 = vector.load %arg10[%c0_21, %c0_22] : memref<8x3xf32, #tpu.memory_space<vmem>>, vector<8x3xf32>
    tpu.vector_store %arg10[%c0_21, %c0_22], %36 {strides = array<i32>} : memref<8x3xf32, #tpu.memory_space<vmem>>, vector<8x3xf32>,
    return
  }
  func.func @transform_0(%arg0: i32) -> i32 {
    %c0_i32 = arith.constant 0 : i32
    %c0_i32_0 = arith.constant 0 : i32
    return %c0_i32 : i32
  }
  func.func @transform_1(%arg0: i32) -> (i32, i32) {
    %c0_i32 = arith.constant 0 : i32
    %c0_i32_0 = arith.constant 0 : i32
    return %arg0, %c0_i32 : i32, i32
  }
  func.func @transform_2(%arg0: i32) -> (i32, i32) {
    %c0_i32 = arith.constant 0 : i32
    %c0_i32_0 = arith.constant 0 : i32
    return %arg0, %c0_i32 : i32, i32
  }
  func.func @transform_3(%arg0: i32) -> (i32, i32) {
    %c0_i32 = arith.constant 0 : i32
    %c0_i32_0 = arith.constant 0 : i32
    %c0_i32_1 = arith.constant 0 : i32
    return %c0_i32, %c0_i32_0 : i32, i32
  }
  func.func @transform_4(%arg0: i32) -> (i32, i32) {
    %c0_i32 = arith.constant 0 : i32
    %c0_i32_0 = arith.constant 0 : i32
    %c0_i32_1 = arith.constant 0 : i32
    return %c0_i32, %c0_i32_0 : i32, i32
  }
  func.func @transform_5(%arg0: i32) -> (i32, i32) {
    %c0_i32 = arith.constant 0 : i32
    %c0_i32_0 = arith.constant 0 : i32
    %c0_i32_1 = arith.constant 0 : i32
    return %c0_i32, %c0_i32_0 : i32, i32
  }
  func.func @transform_6(%arg0: i32) -> (i32, i32) {
    %c0_i32 = arith.constant 0 : i32
    %c0_i32_0 = arith.constant 0 : i32
    %c0_i32_1 = arith.constant 0 : i32
    return %c0_i32, %c0_i32_0 : i32, i32
  }
  func.func @transform_7(%arg0: i32) -> (i32, i32) {
    %c0_i32 = arith.constant 0 : i32
    %c0_i32_0 = arith.constant 0 : i32
    %c0_i32_1 = arith.constant 0 : i32
    return %c0_i32, %c0_i32_0 : i32, i32
  }
  func.func @transform_8(%arg0: i32) -> (i32, i32) {
    %c0_i32 = arith.constant 0 : i32
    %c0_i32_0 = arith.constant 0 : i32
    %c0_i32_1 = arith.constant 0 : i32
    return %c0_i32, %c0_i32_0 : i32, i32
  }
  func.func @transform_9(%arg0: i32) -> (i32, i32) {
    %c0_i32 = arith.constant 0 : i32
    %c0_i32_0 = arith.constant 0 : i32
    return %arg0, %c0_i32 : i32, i32
  }
}

</mosaic_0001>

<bundles_post_ra>
// kernel: tpu_custom_call.1
= control target key start
LH: loop header
LB: loop body
LE: loop exit
PB: predicated region body
PF: predicated region fallthrough
CT: control target
= control target key end

     0   :  { %14 = vsyncpa [#allocation5], 0  ;;  %s618_s0 = inlined_call_operand.hbm [shape: f32[3], index: 0, kind: input, shape index: {}]   ;;  %s619_s1 = inlined_call_operand.hbm [shape: f32[8,16], index: 1, kind: input, shape index: {}]   ;;  %s620_s2 = inlined_call_operand.hbm [shape: f32[8,32], index: 2, kind: input, shape index: {}]   ;;  %s621_s3 = inlined_call_operand.vmem [shape: f32[1,16], index: 3, kind: input, shape index: {}]   ;;  %s622_s4 = inlined_call_operand.hbm [shape: f32[32,32], index: 4, kind: input, shape index: {}]   ;;  %s623_s5 = inlined_call_operand.vmem [shape: f32[1,32], index: 5, kind: input, shape index: {}]   ;;  %s624_s6 = inlined_call_operand.hbm [shape: f32[32,32], index: 6, kind: input, shape index: {}]   ;;  %s625_s7 = inlined_call_operand.vmem [shape: f32[1,32], index: 7, kind: input, shape index: {}]   ;;  %s626_s8 = inlined_call_operand.vmem [shape: f32[1,32], index: 8, kind: input, shape index: {}]   ;;  %s627_s9 = inlined_call_operand.hbm [shape: f32[3,8], index: 9, kind: output, shape index: {}]  }
   0x1   :  { %15 = vsyncpa [#allocation3], 0 }
   0x2   :  { %16 = vsyncpa [#allocation8], 0 }
   0x3   :  { %17 = vsyncpa [#allocation11], 0 }
   0x4   :  { %18 = vsyncpa [#allocation4], 0  ;;  %s525_s30 = smov [#allocation7]   ;;  %s526_s11 = smov [#allocation6]  }
   0x5   :  { %s43_s10 = sshll.u32 %s525_s30, 4  ;;  %s33_s12 = sshll.u32 %s526_s11, 4  ;;  %s44_s10 = int_to_ptr.vmem [resolvable:$true] %s43_s10  ;;  %s34_s12 = int_to_ptr.vmem [resolvable:$true] %s33_s12 }
   0x6   :  { %s415_s13 = scalar_lea.vmem %s44_s10, 128  ;;  %p420_p1 = scmp.lt.s32.totalorder %s44_s10, %s44_s10 }
   0x7   :  { %p416_p0 = scmp.ne.s32.totalorder %s44_s10, %s415_s13  ;;  %p421_p2 = scmp.lt.s32.totalorder %s415_s13, %s415_s13 }
   0x9   :  { %p422_p3 = por %p421_p2, %p420_p1 }
   0xb   :  { %p423_p4 = pnand %p422_p3, %p416_p0 }
   0xd   :  { %426 = shalt.err (!%p423_p4)
}
   0xe   :  { %46 = dma.hbm_to_vmem [thread:$0]  %s620_s2, 128, %s44_s10, [#allocation8]  }
   0xf   :  { %s527_s16 = smov [#allocation2]   ;;  %s443_s19 = scalar_lea.vmem %s34_s12, 128 }
  0x10   :  { %26 = dma.hbm_to_smem %s618_s0, 16, %s527_s16, [#allocation5]  }
  0x11   :  { %p444_p5 = scmp.ne.s32.totalorder %s34_s12, %s443_s19  ;;  %p448_p6 = scmp.lt.s32.totalorder %s34_s12, %s34_s12 }
  0x12   :  { %p449_p7 = scmp.lt.s32.totalorder %s443_s19, %s443_s19 }
  0x14   :  { %p450_p8 = por %p449_p7, %p448_p6 }
  0x16   :  { %p451_p9 = pnand %p450_p8, %p444_p5 }
  0x18   :  { %454 = shalt.err (!%p451_p9)
}
  0x19   :  { %36 = dma.hbm_to_vmem [thread:$0]  %s619_s1, 128, %s34_s12, [#allocation3]  }
  0x1a   :  { %s528_s22 = smov [#allocation9]  }
  0x1b   :  { %s54_s23 = sshll.u32 %s528_s22, 4  ;;  %s55_s23 = int_to_ptr.vmem [resolvable:$true] %s54_s23 }
  0x1c   :  { %s463_s2 = scalar_lea.vmem %s55_s23, 512  ;;  %p468_p11 = scmp.lt.s32.totalorder %s55_s23, %s55_s23 }
  0x1d   :  { %p464_p10 = scmp.ne.s32.totalorder %s55_s23, %s463_s2  ;;  %p469_p12 = scmp.lt.s32.totalorder %s463_s2, %s463_s2 }
  0x1f   :  { %p470_p13 = por %p469_p12, %p468_p11 }
  0x21   :  { %p471_p0 = pnand %p470_p13, %p464_p10 }
  0x23   :  { %474 = shalt.err (!%p471_p0)
}
  0x24   :  { %s529_s0 = smov 128   ;;  %s530_s24 = smov 8  }
  0x25   :  { %60 = dma.hbm_to_vmem [thread:$0]  %s622_s4, 512, %s55_s23, [#allocation8], %s529_s0, %s529_s0, %s530_s24  }
  0x26   :  { %s531_s27 = smov [#allocation10]  }
  0x27   :  { %s68_s28 = sshll.u32 %s531_s27, 4  ;;  %s69_s28 = int_to_ptr.vmem [resolvable:$true] %s68_s28 }
  0x28   :  { %s483_s1 = scalar_lea.vmem %s69_s28, 512  ;;  %p488_p2 = scmp.lt.s32.totalorder %s69_s28, %s69_s28 }
  0x29   :  { %p484_p1 = scmp.ne.s32.totalorder %s69_s28, %s483_s1  ;;  %p489_p3 = scmp.lt.s32.totalorder %s483_s1, %s483_s1 }
  0x2b   :  { %p490_p4 = por %p489_p3, %p488_p2 }
  0x2d   :  { %p491_p5 = pnand %p490_p4, %p484_p1 }
  0x2f   :  { %494 = shalt.err (!%p491_p5)
}
  0x30   :  { %74 = dma.hbm_to_vmem [thread:$0]  %s624_s6, 512, %s69_s28, [#allocation11], %s529_s0, %s529_s0, %s530_s24  }
  0x31   :  { %515 = dma.done.wait [#allocation5], 16  }
  0x32   :  { %516 = vsyncadd [#allocation5], 4294967280 }
  0x33   :  { %517 = dma.done.wait [#allocation3], 128  }
  0x34   :  { %518 = vsyncadd [#allocation3], 4294967168 }
  0x35   :  { %519 = dma.done.wait [#allocation8], 640  }
  0x36   :  { %520 = vsyncadd [#allocation8], 4294966656 }
  0x37   :  { %521 = dma.done.wait [#allocation11], 512  }
  0x38   :  { %522 = vsyncadd [#allocation11], 4294966784 }
  0x39   :  { %94 = sfence }
  0x3a   :  { %v102_v0 = vld [vmem:[#allocation9 + $0x18] sm:$0xff]  ;;  %v532_v1 = vmov 0.0   ;;  %v101_v2 = vld [vmem:[#allocation9 + $0x10] sm:$0xff]  ;;  %vm533_vm0 = vmmov 0   ;;  %v100_v4 = vld [vmem:[#allocation9 + $0x8] sm:$0xff]  ;;  %vm131_vm1 = vcmask 261120  }
  0x3b   :  { %375 = vmatprep.subr.mxu0 %v532_v1  ;;  %383 = vmatprep.mubr.msk.f32.mxu0 %vm533_vm0, %v532_v1  ;;  %v107_v3 = vld [vmem:[#allocation10 + $0x18] sm:$0xff]  ;;  %v99_v5 = vld [vmem:[#allocation9] sm:$0xff]  ;;  %v106_v7 = vld [vmem:[#allocation10 + $0x10] sm:$0xff]  ;;  %vm119_vm2 = vcmask 130048   ;;  %s357_s15 = sld [smem:[#allocation2 + $0x1]]  ;;  %vm301_vm3 = vcmask 7168  }
  0x3c   :  { %376 = vmatpush3.msra.mxu0 %v102_v0  ;;  %386 = vmatprep.subr.mxu1 %v532_v1  ;;  %v111_v6 = vld [vmem:[#allocation7] sm:$0xff]  ;;  %v105_v8 = vld [vmem:[#allocation10 + $0x8] sm:$0xff]  ;;  %v104_v9 = vld [vmem:[#allocation10] sm:$0xff]  ;;  %s358_s16 = sld [smem:[#allocation2 + $0x2]]  ;;  %vm303_vm4 = vcmask 15360   ;;  %vm337_vm5 = vcmask 59392  }
  0x3d   :  { %377 = vmatprep.subr.mxu0 %v532_v1  ;;  %387 = vmatpush3.msra.mxu1 %v107_v3  ;;  %v360_v10 = vld [vmem:[%s623_s5] ss:$0 sm:$0xff] }
  0x3e   :  { %378 = vmatpush3.msra.mxu0 %v101_v2  ;;  %388 = vmatprep.subr.mxu1 %v532_v1  ;;  %v359_v15 = vld [vmem:[%s621_s3] ss:$0 sm:$0xff]  ;;  %s95_s3 = sld [smem:[#allocation2]] }
  0x3f   :  { %379 = vmatprep.subr.mxu0 %v532_v1  ;;  %394 = vmatprep.mubr.msk.f32.mxu1 %vm533_vm0, %v532_v1  ;;  %v110_v16 = vld [vmem:[#allocation6] sm:$0xff] }
  0x40   :  { %380 = vmatpush3.msra.mxu0 %v100_v4  ;;  %389 = vmatpush3.msra.mxu1 %v106_v7  ;;  %v118_v17 = vmul.f32 %v359_v15, %v110_v16  ;;  %v362_v19 = vld [vmem:[%s625_s7] ss:$0 sm:$0xff]  ;;  %s534_s7 = smov [#allocation12]  }
  0x41   :  { %381 = vmatprep.subr.mxu0 %v532_v1  ;;  %390 = vmatprep.subr.mxu1 %v532_v1  ;;  %v364_v23 = vld [vmem:[%s626_s8] ss:$0 sm:$0xff]  ;;  %v296_v29 = vstv %s357_s15  ;;  %s345_s8 = sshll.u32 %s534_s7, 4  ;;  %s346_s8 = int_to_ptr.vmem [resolvable:$true] %s345_s8 }
  0x42   :  { %382 = vmatpush3.msra.mxu0 %v99_v5  ;;  %391 = vmatpush3.msra.mxu1 %v105_v8  ;;  %v120_v18 = vsel %vm119_vm2, %v118_v17, 0.0  ;;  %v299_v33 = vstv %s358_s16  ;;  %s495_s17 = scalar_lea.vmem %s346_s8, 64  ;;  %p500_p7 = scmp.lt.s32.totalorder %s346_s8, %s346_s8 }
  0x43   :  { %384 = vmatmul.mubr.msk.f32.vlgmr.msra.gmra.mxu0 %vm131_vm1, %v111_v6  ;;  %392 = vmatprep.subr.mxu1 %v532_v1  ;;  %p496_p6 = scmp.ne.s32.totalorder %s346_s8, %s495_s17  ;;  %p501_p8 = scmp.lt.s32.totalorder %s495_s17, %s495_s17 }
  0x44   :  { %393 = vmatpush3.msra.mxu1 %v104_v9  ;;  %121 = vadd.xlane.f32.xlu0 %v120_v18  ;;  %v123_v28 = vstv %s95_s3 }
  0x45   :  { %p502_p9 = por %p501_p8, %p500_p7 }
  0x47   :  { %p503_p10 = pnand %p502_p9, %p496_p6 }
  0xcd   :  { %v122_v27 = vpop.xlane.xlu0 %121 }
  0xce   :  { %v124_v31 = vadd.f32 %v123_v28, %v122_v27 }
 0x103   :  { %v201_v11 = vpop.f32.mrf.mxu0 }
 0x104   :  { %v202_v12 = vadd.f32 %v360_v10, %v201_v11 }
 0x105   :  { %v385_v13 = vpop.f32.mrf.mxu0 }
 0x106   :  { %v205_v14 = vmax.f32 %v202_v12, 0.0 }
 0x108   :  { %395 = vmatmul.mubr.msk.f32.vlgmr.msra.gmra.mxu1 %vm131_vm1, %v205_v14 }
 0x1c8   :  { %v281_v20 = vpop.f32.mrf.mxu1 }
 0x1c9   :  { %v282_v21 = vadd.f32 %v362_v19, %v281_v20 }
 0x1ca   :  { %v396_v22 = vpop.f32.mrf.mxu1 }
 0x1cb   :  { %v285_v24 = vmax.f32 %v282_v21, 0.0 }
 0x1cd   :  { %v292_v25 = vmul.f32 %v364_v23, %v285_v24 }
 0x1cf   :  { %v293_v26 = vsel %vm131_vm1, %v292_v25, 0.0 }
 0x1d0   :  { %294 = vadd.xlane.f32.xlu0 %v293_v26 }
 0x259   :  { %v295_v30 = vpop.xlane.xlu0 %294 }
 0x25a   :  { %v297_v32 = vadd.f32 %v296_v29, %v295_v30 }
 0x25c   :  { %v298_v34 = vadd.f32 %v297_v32, %v124_v31  ;;  %v302_v36 = vsel %vm301_vm3, %v124_v31, %v297_v32 }
 0x25e   :  { %v300_v35 = vadd.f32 %v299_v33, %v298_v34 }
 0x260   :  { %v304_v37 = vsel %vm303_vm4, %v302_v36, %v300_v35 }
 0x261   :  { %305 = vxpose.xlu1.b32.start.end [1/1] (short) (narrow) %v304_v37, 8 }
 0x2dd   :  { %v321_v38 = vpop.trf.xlu1 }
 0x2de   :  { %338 = vst.msk [vmem:[#allocation12] sm:$0x7] %vm337_vm5, %v321_v38 }
 0x2df   :  { %506 = shalt.err (!%p503_p10)
}
 0x2e0   :  { %348 = dma.vmem_to_hbm [thread:$0]  %s346_s8, 64, %s627_s9, [#allocation4]  }
 0x2e1   :  { %523 = dma.done.wait [#allocation4], 64  }
 0x2e2   :  { %524 = vsyncadd [#allocation4], 4294967232 }
 0x2e3   :  { %352 = vsyncpa [#allocation3], 1 }
 0x2e4   :  { %353 = vsyncpa [#allocation8], 1 }
 0x2e5   :  { %354 = vsyncpa [#allocation11], 1 }
 0x2e6   :  { %355 = vsyncpa [#allocation4], 1 }
 0x2e7   :  { %356 = vsyncpa [#allocation5], 1 }

// kernel: tpu_custom_call.1
= control target key start
LH: loop header
LB: loop body
LE: loop exit
PB: predicated region body
PF: predicated region fallthrough
CT: control target
= control target key end

     0   :  { %14 = vsyncpa [#allocation4], 0  ;;  %s551_s0 = inlined_call_operand.hbm [shape: f32[3], index: 0, kind: input, shape index: {}]   ;;  %s552_s1 = inlined_call_operand.hbm [shape: f32[8,16], index: 1, kind: input, shape index: {}]   ;;  %s553_s2 = inlined_call_operand.hbm [shape: f32[8,32], index: 2, kind: input, shape index: {}]   ;;  %s554_s3 = inlined_call_operand.vmem [shape: f32[1,16], index: 3, kind: input, shape index: {}]   ;;  %s555_s4 = inlined_call_operand.hbm [shape: f32[32,32], index: 4, kind: input, shape index: {}]   ;;  %s556_s5 = inlined_call_operand.vmem [shape: f32[1,32], index: 5, kind: input, shape index: {}]   ;;  %s557_s6 = inlined_call_operand.hbm [shape: f32[32,32], index: 6, kind: input, shape index: {}]   ;;  %s558_s7 = inlined_call_operand.vmem [shape: f32[1,32], index: 7, kind: input, shape index: {}]   ;;  %s559_s8 = inlined_call_operand.vmem [shape: f32[1,32], index: 8, kind: input, shape index: {}]   ;;  %s560_s9 = inlined_call_operand.vmem [shape: f32[8,3], index: 9, kind: output, shape index: {}]  }
   0x1   :  { %15 = vsyncpa [#allocation3], 0 }
   0x2   :  { %16 = vsyncpa [#allocation7], 0 }
   0x3   :  { %17 = vsyncpa [#allocation10], 0  ;;  %s459_s30 = smov [#allocation6]   ;;  %s460_s11 = smov [#allocation5]  }
   0x4   :  { %s42_s10 = sshll.u32 %s459_s30, 4  ;;  %s32_s12 = sshll.u32 %s460_s11, 4  ;;  %s43_s10 = int_to_ptr.vmem [resolvable:$true] %s42_s10  ;;  %s33_s12 = int_to_ptr.vmem [resolvable:$true] %s32_s12 }
   0x5   :  { %s371_s13 = scalar_lea.vmem %s43_s10, 128  ;;  %p376_p1 = scmp.lt.s32.totalorder %s43_s10, %s43_s10 }
   0x6   :  { %p372_p0 = scmp.ne.s32.totalorder %s43_s10, %s371_s13  ;;  %p377_p2 = scmp.lt.s32.totalorder %s371_s13, %s371_s13 }
   0x8   :  { %p378_p3 = por %p377_p2, %p376_p1 }
   0xa   :  { %p379_p4 = pnand %p378_p3, %p372_p0 }
   0xc   :  { %382 = shalt.err (!%p379_p4)
}
   0xd   :  { %45 = dma.hbm_to_vmem [thread:$0]  %s553_s2, 128, %s43_s10, [#allocation7]  }
   0xe   :  { %s461_s16 = smov [#allocation2]   ;;  %s399_s19 = scalar_lea.vmem %s33_s12, 128 }
   0xf   :  { %25 = dma.hbm_to_smem %s551_s0, 16, %s461_s16, [#allocation4]  }
  0x10   :  { %p400_p5 = scmp.ne.s32.totalorder %s33_s12, %s399_s19  ;;  %p404_p6 = scmp.lt.s32.totalorder %s33_s12, %s33_s12 }
  0x11   :  { %p405_p7 = scmp.lt.s32.totalorder %s399_s19, %s399_s19 }
  0x13   :  { %p406_p8 = por %p405_p7, %p404_p6 }
  0x15   :  { %p407_p9 = pnand %p406_p8, %p400_p5 }
  0x17   :  { %410 = shalt.err (!%p407_p9)
}
  0x18   :  { %35 = dma.hbm_to_vmem [thread:$0]  %s552_s1, 128, %s33_s12, [#allocation3]  }
  0x19   :  { %s462_s22 = smov [#allocation8]  }
  0x1a   :  { %s53_s23 = sshll.u32 %s462_s22, 4  ;;  %s54_s23 = int_to_ptr.vmem [resolvable:$true] %s53_s23 }
  0x1b   :  { %s419_s2 = scalar_lea.vmem %s54_s23, 512  ;;  %p424_p11 = scmp.lt.s32.totalorder %s54_s23, %s54_s23 }
  0x1c   :  { %p420_p10 = scmp.ne.s32.totalorder %s54_s23, %s419_s2  ;;  %p425_p12 = scmp.lt.s32.totalorder %s419_s2, %s419_s2 }
  0x1e   :  { %p426_p13 = por %p425_p12, %p424_p11 }
  0x20   :  { %p427_p0 = pnand %p426_p13, %p420_p10 }
  0x22   :  { %430 = shalt.err (!%p427_p0)
}
  0x23   :  { %s463_s0 = smov 128   ;;  %s464_s24 = smov 8  }
  0x24   :  { %59 = dma.hbm_to_vmem [thread:$0]  %s555_s4, 512, %s54_s23, [#allocation7], %s463_s0, %s463_s0, %s464_s24  }
  0x25   :  { %s465_s27 = smov [#allocation9]  }
  0x26   :  { %s67_s28 = sshll.u32 %s465_s27, 4  ;;  %s68_s28 = int_to_ptr.vmem [resolvable:$true] %s67_s28 }
  0x27   :  { %s439_s1 = scalar_lea.vmem %s68_s28, 512  ;;  %p444_p2 = scmp.lt.s32.totalorder %s68_s28, %s68_s28 }
  0x28   :  { %p440_p1 = scmp.ne.s32.totalorder %s68_s28, %s439_s1  ;;  %p445_p3 = scmp.lt.s32.totalorder %s439_s1, %s439_s1 }
  0x2a   :  { %p446_p4 = por %p445_p3, %p444_p2 }
  0x2c   :  { %p447_p5 = pnand %p446_p4, %p440_p1 }
  0x2e   :  { %450 = shalt.err (!%p447_p5)
}
  0x2f   :  { %73 = dma.hbm_to_vmem [thread:$0]  %s557_s6, 512, %s68_s28, [#allocation10], %s463_s0, %s463_s0, %s464_s24  }
  0x30   :  { %451 = dma.done.wait [#allocation4], 16  }
  0x31   :  { %452 = vsyncadd [#allocation4], 4294967280 }
  0x32   :  { %453 = dma.done.wait [#allocation3], 128  }
  0x33   :  { %454 = vsyncadd [#allocation3], 4294967168 }
  0x34   :  { %455 = dma.done.wait [#allocation7], 640  }
  0x35   :  { %456 = vsyncadd [#allocation7], 4294966656 }
  0x36   :  { %457 = dma.done.wait [#allocation10], 512  }
  0x37   :  { %458 = vsyncadd [#allocation10], 4294966784 }
  0x38   :  { %93 = sfence }
  0x39   :  { %v101_v0 = vld [vmem:[#allocation8 + $0x18] sm:$0xff]  ;;  %v466_v1 = vmov 0.0   ;;  %v100_v2 = vld [vmem:[#allocation8 + $0x10] sm:$0xff]  ;;  %vm467_vm0 = vmmov 0   ;;  %v99_v4 = vld [vmem:[#allocation8 + $0x8] sm:$0xff]  ;;  %vm130_vm1 = vcmask 261120  }
  0x3a   :  { %332 = vmatprep.subr.mxu0 %v466_v1  ;;  %340 = vmatprep.mubr.msk.f32.mxu0 %vm467_vm0, %v466_v1  ;;  %v106_v3 = vld [vmem:[#allocation9 + $0x18] sm:$0xff]  ;;  %v98_v5 = vld [vmem:[#allocation8] sm:$0xff]  ;;  %v105_v7 = vld [vmem:[#allocation9 + $0x10] sm:$0xff]  ;;  %vm118_vm2 = vcmask 130048   ;;  %s314_s15 = sld [smem:[#allocation2 + $0x1]]  ;;  %vm300_vm3 = vcmask 7168  }
  0x3b   :  { %333 = vmatpush3.msra.mxu0 %v101_v0  ;;  %343 = vmatprep.subr.mxu1 %v466_v1  ;;  %v110_v6 = vld [vmem:[#allocation6] sm:$0xff]  ;;  %v104_v8 = vld [vmem:[#allocation9 + $0x8] sm:$0xff]  ;;  %v103_v9 = vld [vmem:[#allocation9] sm:$0xff]  ;;  %s315_s16 = sld [smem:[#allocation2 + $0x2]]  ;;  %vm302_vm4 = vcmask 15360   ;;  %vm304_vm5 = vcmask 23552  }
  0x3c   :  { %334 = vmatprep.subr.mxu0 %v466_v1  ;;  %344 = vmatpush3.msra.mxu1 %v106_v3  ;;  %v317_v10 = vld [vmem:[%s556_s5] ss:$0 sm:$0xff] }
  0x3d   :  { %335 = vmatpush3.msra.mxu0 %v100_v2  ;;  %345 = vmatprep.subr.mxu1 %v466_v1  ;;  %v316_v15 = vld [vmem:[%s554_s3] ss:$0 sm:$0xff]  ;;  %s94_s3 = sld [smem:[#allocation2]] }
  0x3e   :  { %336 = vmatprep.subr.mxu0 %v466_v1  ;;  %351 = vmatprep.mubr.msk.f32.mxu1 %vm467_vm0, %v466_v1  ;;  %v109_v16 = vld [vmem:[#allocation5] sm:$0xff] }
  0x3f   :  { %337 = vmatpush3.msra.mxu0 %v99_v4  ;;  %346 = vmatpush3.msra.mxu1 %v105_v7  ;;  %v117_v17 = vmul.f32 %v316_v15, %v109_v16  ;;  %v319_v19 = vld [vmem:[%s558_s7] ss:$0 sm:$0xff] }
  0x40   :  { %338 = vmatprep.subr.mxu0 %v466_v1  ;;  %347 = vmatprep.subr.mxu1 %v466_v1  ;;  %v321_v23 = vld [vmem:[%s559_s8] ss:$0 sm:$0xff]  ;;  %v295_v29 = vstv %s314_s15 }
  0x41   :  { %339 = vmatpush3.msra.mxu0 %v98_v5  ;;  %348 = vmatpush3.msra.mxu1 %v104_v8  ;;  %v119_v18 = vsel %vm118_vm2, %v117_v17, 0.0  ;;  %v298_v33 = vstv %s315_s16 }
  0x42   :  { %341 = vmatmul.mubr.msk.f32.vlgmr.msra.gmra.mxu0 %vm130_vm1, %v110_v6  ;;  %349 = vmatprep.subr.mxu1 %v466_v1 }
  0x43   :  { %350 = vmatpush3.msra.mxu1 %v103_v9  ;;  %120 = vadd.xlane.f32.xlu0 %v119_v18  ;;  %v122_v28 = vstv %s94_s3 }
  0xcc   :  { %v121_v27 = vpop.xlane.xlu0 %120 }
  0xcd   :  { %v123_v31 = vadd.f32 %v122_v28, %v121_v27 }
 0x102   :  { %v200_v11 = vpop.f32.mrf.mxu0 }
 0x103   :  { %v201_v12 = vadd.f32 %v317_v10, %v200_v11 }
 0x104   :  { %v342_v13 = vpop.f32.mrf.mxu0 }
 0x105   :  { %v204_v14 = vmax.f32 %v201_v12, 0.0 }
 0x107   :  { %352 = vmatmul.mubr.msk.f32.vlgmr.msra.gmra.mxu1 %vm130_vm1, %v204_v14 }
 0x1c7   :  { %v280_v20 = vpop.f32.mrf.mxu1 }
 0x1c8   :  { %v281_v21 = vadd.f32 %v319_v19, %v280_v20 }
 0x1c9   :  { %v353_v22 = vpop.f32.mrf.mxu1 }
 0x1ca   :  { %v284_v24 = vmax.f32 %v281_v21, 0.0 }
 0x1cc   :  { %v291_v25 = vmul.f32 %v321_v23, %v284_v24 }
 0x1ce   :  { %v292_v26 = vsel %vm130_vm1, %v291_v25, 0.0 }
 0x1cf   :  { %293 = vadd.xlane.f32.xlu0 %v292_v26 }
 0x258   :  { %v294_v30 = vpop.xlane.xlu0 %293 }
 0x259   :  { %v296_v32 = vadd.f32 %v295_v29, %v294_v30 }
 0x25b   :  { %v297_v34 = vadd.f32 %v296_v32, %v123_v31  ;;  %v301_v36 = vsel %vm300_vm3, %v123_v31, %v296_v32 }
 0x25d   :  { %v299_v35 = vadd.f32 %v298_v33, %v297_v34 }
 0x25f   :  { %v303_v37 = vsel %vm302_vm4, %v301_v36, %v299_v35 }
 0x260   :  { %305 = vst.msk [vmem:[%s560_s9] sm:$0xff] %vm304_vm5, %v303_v37 }
 0x261   :  { %310 = vsyncpa [#allocation3], 1 }
 0x262   :  { %311 = vsyncpa [#allocation7], 1 }
 0x263   :  { %312 = vsyncpa [#allocation10], 1 }
 0x264   :  { %313 = vsyncpa [#allocation4], 1 }

</bundles_post_ra>
